<compile_context>
chip_gen: v7x
topology: tpu7x:2x2x1
jax: 0.10.0
libtpu: 0.0.40
codegen_flags: <defaults>
</compile_context>

<pallas_src>
import functools

import jax
import jax.numpy as jnp
from jax.experimental import pallas as pl
from jax.experimental.pallas import tpu as pltpu

_IN_DIM = 32 * 32 * 1      # flattened input features
_N_PAD = 128               # lane-dense output width (logits padded 10 -> 128)


def _round_up(x, m):
    return -(-x // m) * m


def _physical_vmem_bytes():
    try:
        return int(pltpu.get_tpu_info().vmem_capacity_bytes)
    except Exception:
        return 64 * 1024 * 1024          # conservative: v7x per-TC VMEM


def _make_resident_spec_factory():
    """BlockSpec factory for grid-invariant (weight) inputs.

    Single-buffers them when pipeline_mode=pl.Buffered(1) is available
    (halves dead VMEM for large H); otherwise falls back to the default.
    Returns (factory, buffers_per_weight).
    """
    if hasattr(pl, "Buffered"):
        try:
            pl.BlockSpec((8, 128), lambda i: (0, 0), pipeline_mode=pl.Buffered(1))

            def factory(shape, index_map):
                return pl.BlockSpec(shape, index_map, pipeline_mode=pl.Buffered(1))

            return factory, 1
        except TypeError:
            pass
    return (lambda shape, index_map: pl.BlockSpec(shape, index_map)), 2


def _mlp_kernel(x_ref, w1_ref, b1_ref, w2_ref, b2_ref, o_ref, *, function):
    # x_ref:  (TB, 1024) f32       w1_ref: (1024, H) bf16   b1_ref: (1, H)   f32
    # w2_ref: (H, 128)   bf16      b2_ref: (1, 128)  f32    o_ref:  (TB,128) f32
    x = x_ref[...].astype(jnp.bfloat16)          # cast in-kernel (VPU, hidden under DMA)
    h = jnp.dot(x, w1_ref[...], preferred_element_type=jnp.float32)   # MXU, f32 acc
    h = h + b1_ref[...]
    if function == "tanh":
        h = jnp.tanh(h)                          # EUP
    elif function == "sigmoid":
        h = jax.nn.sigmoid(h)                    # EUP
    elif function == "relu":
        h = jnp.maximum(h, 0.0)                  # VPU
    # else: no activation (matches the PyTorch fall-through)
    out = jnp.dot(h.astype(w2_ref.dtype), w2_ref[...],
                  preferred_element_type=jnp.float32)
    o_ref[...] = (out + b2_ref[...]).astype(o_ref.dtype)


def prepare_params(w1, b1, w2, b2):
    """One-time weight prep: bf16 casts + lane-dense N padding. Cache the result."""
    H = w1.shape[1]
    N = w2.shape[1]
    w1_bf = w1.astype(jnp.bfloat16)
    b1_f = jnp.asarray(b1, jnp.float32).reshape(1, H)
    w2_p = jnp.zeros((H, _N_PAD), jnp.bfloat16).at[:, :N].set(w2.astype(jnp.bfloat16))
    b2_p = jnp.zeros((1, _N_PAD), jnp.float32).at[:, :N].set(
        jnp.asarray(b2, jnp.float32).reshape(1, N))
    return w1_bf, b1_f, w2_p, b2_p


def model2_forward(x, w1_bf, b1_f, w2_p, b2_p, *, function="relu", out_dim=10):
    """x: [B, 1, 32, 32] float32 -> logits [B, out_dim] float32."""
    B = x.shape[0]
    x_flat = x.reshape(B, -1)                     # torch.flatten(x, 1)
    in_dim = x_flat.shape[1]
    H = w1_bf.shape[1]

    # ---- batch tiling ------------------------------------------------------
    B8 = _round_up(B, 8)
    TB_MAX = 1024
    if B8 <= 2 * TB_MAX:
        # aim for >=2 grid steps whenever B8 > 8 (keeps both v7x TCs busy and
        # lets the DMA / compute pipeline actually overlap)
        TB = min(TB_MAX, max(8, _round_up(-(-B8 // 2), 8)))
    else:
        TB = TB_MAX
    if TB >= 128:
        TB = _round_up(TB, 128)                   # keep the MXU M-dim packed
    B_pad = _round_up(B8, TB)

    # ---- VMEM budget: shrink TB if the estimate won't fit -------------------
    resident_spec, w_bufs = _make_resident_spec_factory()

    def est_vmem(tb):
        x_blk = 2 * tb * in_dim * 4                                   # f32 x, dbl-buffered
        o_blk = 2 * tb * _N_PAD * 4                                   # f32 out, dbl-buffered
        wts = w_bufs * (in_dim * H * 2 + H * 4 + H * _N_PAD * 2 + _N_PAD * 4)
        live = tb * in_dim * 2 + tb * H * 4 + tb * H * 2 + tb * _N_PAD * 4
        return x_blk + o_blk + wts + live

    phys = _physical_vmem_bytes()
    cap = int(phys * 0.8)                          # headroom for Mosaic internal scratch
    while TB > 8 and est_vmem(TB) > cap:
        TB = max(8, _round_up(TB // 2, 8))
        B_pad = _round_up(B8, TB)
    vmem_limit = int(min(cap, max(est_vmem(TB) + (4 << 20), 32 << 20)))

    # ---- pad the batch only when strictly necessary (f32, no extra cast) ----
    if B_pad != B:
        x_flat = jnp.pad(x_flat, ((0, B_pad - B), (0, 0)))

    # ---- cost hint for XLA's scheduler --------------------------------------
    flops = 2 * B_pad * (in_dim * H + H * _N_PAD)
    transcendentals = B_pad * H if function in ("tanh", "sigmoid") else 0
    bytes_accessed = (B_pad * in_dim * 4 + B_pad * _N_PAD * 4
                      + in_dim * H * 2 + H * 4 + H * _N_PAD * 2 + _N_PAD * 4)

    kernel = functools.partial(_mlp_kernel, function=function)

    out_pad = pl.pallas_call(
        kernel,
        out_shape=jax.ShapeDtypeStruct((B_pad, _N_PAD), jnp.float32),
        grid_spec=pltpu.PrefetchScalarGridSpec(
            num_scalar_prefetch=0,
            grid=(B_pad // TB,),
            in_specs=[
                pl.BlockSpec((TB, in_dim), lambda i: (i, 0)),   # x: tiled over batch
                resident_spec((in_dim, H), lambda i: (0, 0)),   # w1: VMEM-resident
                resident_spec((1, H), lambda i: (0, 0)),        # b1: VMEM-resident
                resident_spec((H, _N_PAD), lambda i: (0, 0)),   # w2: resident, lane-dense
                resident_spec((1, _N_PAD), lambda i: (0, 0)),   # b2: resident
            ],
            out_specs=pl.BlockSpec((TB, _N_PAD), lambda i: (i, 0)),
        ),
        compiler_params=pltpu.CompilerParams(
            dimension_semantics=("parallel",),     # batch tiles are independent
            vmem_limit_bytes=vmem_limit,
        ),
        cost_estimate=pl.CostEstimate(flops=flops,
                                      transcendentals=transcendentals,
                                      bytes_accessed=bytes_accessed),
    )(x_flat, w1_bf, b1_f, w2_p, b2_p)

    return out_pad[:B, :out_dim]


def init_params(key, num_neurons):
    """Deterministic init matching nn.Linear shapes (uniform +/- 1/sqrt(fan_in))."""
    k1, k2, k3, k4 = jax.random.split(key, 4)
    bound1 = 1.0 / jnp.sqrt(_IN_DIM)
    bound2 = 1.0 / jnp.sqrt(num_neurons)
    # Stored as (in, out) so the kernel does x @ W directly
    # (equivalent to PyTorch's x @ W.T with W of shape (out, in)).
    w1 = jax.random.uniform(k1, (_IN_DIM, num_neurons), jnp.float32, -bound1, bound1)
    b1 = jax.random.uniform(k2, (1, num_neurons), jnp.float32, -bound1, bound1)
    w2 = jax.random.uniform(k3, (num_neurons, 10), jnp.float32, -bound2, bound2)
    b2 = jax.random.uniform(k4, (1, 10), jnp.float32, -bound2, bound2)
    return w1, b1, w2, b2


if __name__ == "__main__":
    key = jax.random.PRNGKey(0)
    k_x, k_p = jax.random.split(key)

    B = 8
    num_neurons = 128
    function = "relu"

    x = jax.random.normal(k_x, (B, 1, 32, 32), jnp.float32)   # NCHW like PyTorch
    w1, b1, w2, b2 = init_params(k_p, num_neurons)
    params = prepare_params(w1, b1, w2, b2)                    # one-time weight prep

    fwd = jax.jit(functools.partial(model2_forward, function=function))
    out = jax.block_until_ready(fwd(x, *params))

    # sanity check vs. plain-JAX reference using the same bf16 rounding
    x_flat = x.reshape(B, -1)
    xb = x_flat.astype(jnp.bfloat16).astype(jnp.float32)
    w1b = w1.astype(jnp.bfloat16).astype(jnp.float32)
    w2b = w2.astype(jnp.bfloat16).astype(jnp.float32)
    h = jnp.maximum(xb @ w1b + b1, 0.0)
    ref = h.astype(jnp.bfloat16).astype(jnp.float32) @ w2b + b2
    assert out.shape == (B, 10)
    assert jnp.allclose(out, ref, atol=2e-2, rtol=2e-2)

    print("KERNEL_OK")
</pallas_src>

<mosaic_0001>
module attributes {stable_mosaic.version = 11 : i64} {
  func.func @_mlp_kernel(%arg0: i32, %arg1: memref<8x1024xf32, #tpu.memory_space<vmem>>, %arg2: memref<1024x128xbf16, #tpu.memory_space<vmem>>, %arg3: memref<1x128xf32, #tpu.memory_space<vmem>>, %arg4: memref<128x128xbf16, #tpu.memory_space<vmem>>, %arg5: memref<1x128xf32, #tpu.memory_space<vmem>>, %arg6: memref<8x128xf32, #tpu.memory_space<vmem>>) attributes {dimension_semantics = [#tpu.dimension_semantics<parallel>], iteration_bounds = array<i64: 1>, scalar_prefetch = 0 : i64, scratch_operands = 0 : i64, tpu.core_type = #tpu.core_type<tc>, window_params = [{transform_indices = @transform_0, window_bounds = array<i64: 8, 1024>}, {pipeline_mode = #tpu.pipeline_mode<synchronous>, transform_indices = @transform_1, window_bounds = array<i64: 1024, 128>}, {pipeline_mode = #tpu.pipeline_mode<synchronous>, transform_indices = @transform_2, window_bounds = array<i64: 1, 128>}, {pipeline_mode = #tpu.pipeline_mode<synchronous>, transform_indices = @transform_3, window_bounds = array<i64: 128, 128>}, {pipeline_mode = #tpu.pipeline_mode<synchronous>, transform_indices = @transform_4, window_bounds = array<i64: 1, 128>}, {transform_indices = @transform_5, window_bounds = array<i64: 8, 128>}]} {
    %c0 = arith.constant 0 : index
    %c0_0 = arith.constant 0 : index
    %0 = vector.load %arg1[%c0, %c0_0] : memref<8x1024xf32, #tpu.memory_space<vmem>>, vector<8x1024xf32>
    %1 = arith.truncf %0 : vector<8x1024xf32> to vector<8x1024xbf16>
    %c0_1 = arith.constant 0 : index
    %c0_2 = arith.constant 0 : index
    %2 = vector.load %arg2[%c0_1, %c0_2] : memref<1024x128xbf16, #tpu.memory_space<vmem>>, vector<1024x128xbf16>
    %cst = arith.constant dense<0.000000e+00> : vector<8x128xf32>
    %3 = tpu.matmul %1, %2, %cst {dimension_numbers = #tpu.dot_dimension_numbers<[1], [0], [0], [1], [0, 0, 1, 1], [], []>} : vector<8x1024xbf16>, vector<1024x128xbf16>, vector<8x128xf32> -> vector<8x128xf32>
    %c0_3 = arith.constant 0 : index
    %c0_4 = arith.constant 0 : index
    %4 = vector.load %arg3[%c0_3, %c0_4] : memref<1x128xf32, #tpu.memory_space<vmem>>, vector<1x128xf32>
    %5 = vector.broadcast %4 : vector<1x128xf32> to vector<8x128xf32>
    %6 = arith.addf %3, %5 : vector<8x128xf32>
    %cst_5 = arith.constant 0.000000e+00 : f32
    %7 = vector.broadcast %cst_5 : f32 to vector<8x128xf32>
    %8 = arith.maximumf %6, %7 : vector<8x128xf32>
    %9 = arith.truncf %8 : vector<8x128xf32> to vector<8x128xbf16>
    %c0_6 = arith.constant 0 : index
    %c0_7 = arith.constant 0 : index
    %10 = vector.load %arg4[%c0_6, %c0_7] : memref<128x128xbf16, #tpu.memory_space<vmem>>, vector<128x128xbf16>
    %cst_8 = arith.constant dense<0.000000e+00> : vector<8x128xf32>
    %11 = tpu.matmul %9, %10, %cst_8 {dimension_numbers = #tpu.dot_dimension_numbers<[1], [0], [0], [1], [0, 0, 1, 1], [], []>} : vector<8x128xbf16>, vector<128x128xbf16>, vector<8x128xf32> -> vector<8x128xf32>
    %c0_9 = arith.constant 0 : index
    %c0_10 = arith.constant 0 : index
    %12 = vector.load %arg5[%c0_9, %c0_10] : memref<1x128xf32, #tpu.memory_space<vmem>>, vector<1x128xf32>
    %13 = vector.broadcast %12 : vector<1x128xf32> to vector<8x128xf32>
    %14 = arith.addf %11, %13 : vector<8x128xf32>
    %c0_11 = arith.constant 0 : index
    %c0_12 = arith.constant 0 : index
    %15 = vector.load %arg6[%c0_11, %c0_12] : memref<8x128xf32, #tpu.memory_space<vmem>>, vector<8x128xf32>
    tpu.vector_store %arg6[%c0_11, %c0_12], %14 {strides = array<i32>} : memref<8x128xf32, #tpu.memory_space<vmem>>, vector<8x128xf32>,
    return
  }
  func.func @transform_0(%arg0: i32) -> (i32, i32) {
    %c0_i32 = arith.constant 0 : i32
    %c0_i32_0 = arith.constant 0 : i32
    return %arg0, %c0_i32 : i32, i32
  }
  func.func @transform_1(%arg0: i32) -> (i32, i32) {
    %c0_i32 = arith.constant 0 : i32
    %c0_i32_0 = arith.constant 0 : i32
    %c0_i32_1 = arith.constant 0 : i32
    return %c0_i32, %c0_i32_0 : i32, i32
  }
  func.func @transform_2(%arg0: i32) -> (i32, i32) {
    %c0_i32 = arith.constant 0 : i32
    %c0_i32_0 = arith.constant 0 : i32
    %c0_i32_1 = arith.constant 0 : i32
    return %c0_i32, %c0_i32_0 : i32, i32
  }
  func.func @transform_3(%arg0: i32) -> (i32, i32) {
    %c0_i32 = arith.constant 0 : i32
    %c0_i32_0 = arith.constant 0 : i32
    %c0_i32_1 = arith.constant 0 : i32
    return %c0_i32, %c0_i32_0 : i32, i32
  }
  func.func @transform_4(%arg0: i32) -> (i32, i32) {
    %c0_i32 = arith.constant 0 : i32
    %c0_i32_0 = arith.constant 0 : i32
    %c0_i32_1 = arith.constant 0 : i32
    return %c0_i32, %c0_i32_0 : i32, i32
  }
  func.func @transform_5(%arg0: i32) -> (i32, i32) {
    %c0_i32 = arith.constant 0 : i32
    %c0_i32_0 = arith.constant 0 : i32
    return %arg0, %c0_i32 : i32, i32
  }
}

</mosaic_0001>

<bundles_post_ra>
// kernel: model2_forward.1
= control target key start
LH: loop header
LB: loop body
LE: loop exit
PB: predicated region body
PF: predicated region fallthrough
CT: control target
= control target key end

     0   :  { %10 = vsyncpa [#allocation3], 0  ;;  %s1291_s0 = inlined_call_operand.vmem [shape: f32[8,1024], index: 0, kind: input, shape index: {}]   ;;  %s1292_s1 = inlined_call_operand.hbm [shape: bf16[1024,128], index: 1, kind: input, shape index: {}]   ;;  %s1293_s2 = inlined_call_operand.vmem [shape: f32[1,128], index: 2, kind: input, shape index: {}]   ;;  %s1294_s3 = inlined_call_operand.vmem [shape: bf16[128,128], index: 3, kind: input, shape index: {}]   ;;  %s1295_s4 = inlined_call_operand.vmem [shape: f32[1,128], index: 4, kind: input, shape index: {}]   ;;  %s1296_s5 = inlined_call_operand.hbm [shape: f32[8,128], index: 5, kind: output, shape index: {}]  }
   0x1   :  { %11 = vsyncpa [#allocation4], 0  ;;  %s1177_s18 = smov [#allocation2]   ;;  %s1129_s22 = scalar_lea.hbm %s1292_s1, 8192 }
   0x2   :  { %s19_s19 = sshll.u32 %s1177_s18, 4  ;;  %p1130_p0 = scmp.ne.s32.totalorder %s1292_s1, %s1129_s22  ;;  %s20_s19 = int_to_ptr.vmem [resolvable:$true] %s19_s19 }
   0x3   :  { %p1133_p1 = scmp.lt.u32.totalorder %s1129_s22, %s1292_s1 }
   0x5   :  { %p1135_p2 = pnand %p1133_p1, %p1130_p0 }
   0x7   :  { %1138 = shalt.err (!%p1135_p2)
}
   0x8   :  { %s1139_s27 = scalar_lea.vmem %s20_s19, 8192  ;;  %p1144_p4 = scmp.lt.s32.totalorder %s20_s19, %s20_s19 }
   0x9   :  { %p1140_p3 = scmp.ne.s32.totalorder %s20_s19, %s1139_s27  ;;  %p1145_p5 = scmp.lt.s32.totalorder %s1139_s27, %s1139_s27 }
   0xb   :  { %p1146_p6 = por %p1145_p5, %p1144_p4 }
   0xd   :  { %p1147_p7 = pnand %p1146_p6, %p1140_p3 }
   0xf   :  { %1150 = shalt.err (!%p1147_p7)
}
  0x10   :  { %s1178_s28 = smov 64   ;;  %s1179_s29 = smov 4  }
  0x11   :  { %25 = dma.hbm_to_vmem [thread:$0]  %s1292_s1, 8192, %s20_s19, [#allocation3], %s1178_s28, %s1178_s28, %s1179_s29  }
  0x12   :  { %1173 = dma.done.wait [#allocation3], 8192  }
  0x13   :  { %1174 = vsyncadd [#allocation3], 4294959104  ;;  %v1057_v0 = vld [vmem:[#allocation2 + $0x40] sm:$0xff]   ;;  %v1061_v4 = vld [vmem:[#allocation2 + $0x48] sm:$0xff]   ;;  %vm1181_vm0 = vmmov 0   ;;  %s1182_s13 = smov [#allocation5]  }
  0x14   :  { %v1058_v1 = vld [vmem:[#allocation2 + $0xc0] sm:$0xff]   ;;  %934 = vmatprep.subr.bf16.mxu0 %v1057_v0  ;;  %v1062_v5 = vld [vmem:[#allocation2 + $0xc8] sm:$0xff]   ;;  %v1065_v8 = vld [vmem:[#allocation2 + $0x50] sm:$0xff]   ;;  %s851_s14 = sshll.u32 %s1182_s13, 4  ;;  %s852_s14 = int_to_ptr.vmem [resolvable:$true] %s851_s14 }
  0x15   :  { %v1059_v2 = vld [vmem:[#allocation2] sm:$0xff]   ;;  %956 = vmatprep.subr.bf16.mxu1 %v1058_v1  ;;  %v1063_v6 = vld [vmem:[#allocation2 + $0x8] sm:$0xff]   ;;  %v1066_v9 = vld [vmem:[#allocation2 + $0xd0] sm:$0xff]   ;;  %s1151_s15 = scalar_lea.vmem %s852_s14, 128  ;;  %p1156_p9 = scmp.lt.s32.totalorder %s852_s14, %s852_s14 }
  0x16   :  { %v1060_v3 = vld [vmem:[#allocation2 + $0x80] sm:$0xff]   ;;  %935 = vmatpush3.bf16.msra.mxu0 %v1059_v2  ;;  %v1064_v7 = vld [vmem:[#allocation2 + $0x88] sm:$0xff]   ;;  %v1067_v10 = vld [vmem:[#allocation2 + $0x10] sm:$0xff]   ;;  %p1152_p8 = scmp.ne.s32.totalorder %s852_s14, %s1151_s15  ;;  %p1157_p10 = scmp.lt.s32.totalorder %s1151_s15, %s1151_s15 }
  0x17   :  { %957 = vmatpush3.bf16.msra.mxu1 %v1060_v3  ;;  %936 = vmatprep.subr.bf16.mxu0 %v1061_v4  ;;  %v1068_v11 = vld [vmem:[#allocation2 + $0x90] sm:$0xff]   ;;  %v1069_v12 = vld [vmem:[#allocation2 + $0x58] sm:$0xff]   ;;  %v1073_v16 = vld [vmem:[#allocation2 + $0x60] sm:$0xff]  }
  0x18   :  { %958 = vmatprep.subr.bf16.mxu1 %v1062_v5  ;;  %v1070_v13 = vld [vmem:[#allocation2 + $0xd8] sm:$0xff]   ;;  %v1074_v17 = vld [vmem:[#allocation2 + $0xe0] sm:$0xff]   ;;  %v1077_v20 = vld [vmem:[#allocation2 + $0x68] sm:$0xff]   ;;  %p1158_p11 = por %p1157_p10, %p1156_p9 }
  0x19   :  { %v1071_v14 = vld [vmem:[#allocation2 + $0x18] sm:$0xff]   ;;  %v1075_v18 = vld [vmem:[#allocation2 + $0x20] sm:$0xff]   ;;  %v1078_v21 = vld [vmem:[#allocation2 + $0xe8] sm:$0xff]  }
  0x1a   :  { %937 = vmatpush3.bf16.msra.mxu0 %v1063_v6  ;;  %v1072_v15 = vld [vmem:[#allocation2 + $0x98] sm:$0xff]   ;;  %v1076_v19 = vld [vmem:[#allocation2 + $0xa0] sm:$0xff]   ;;  %v1079_v22 = vld [vmem:[#allocation2 + $0x28] sm:$0xff]   ;;  %p1159_p12 = pnand %p1158_p11, %p1152_p8 }
  0x1b   :  { %959 = vmatpush3.bf16.msra.mxu1 %v1064_v7  ;;  %938 = vmatprep.subr.bf16.mxu0 %v1065_v8  ;;  %v1080_v23 = vld [vmem:[#allocation2 + $0xa8] sm:$0xff]   ;;  %v1081_v24 = vld [vmem:[#allocation2 + $0x70] sm:$0xff]   ;;  %v1085_v28 = vld [vmem:[#allocation2 + $0x78] sm:$0xff]  }
  0x1c   :  { %960 = vmatprep.subr.bf16.mxu1 %v1066_v9  ;;  %v1082_v25 = vld [vmem:[#allocation2 + $0xf0] sm:$0xff]   ;;  %v1086_v29 = vld [vmem:[#allocation2 + $0xf8] sm:$0xff]   ;;  %v37_v32 = vld [vmem:[%s1291_s0 + $0x8] sm:$0xff] }
  0x1d   :  { %v1083_v26 = vld [vmem:[#allocation2 + $0x30] sm:$0xff]   ;;  %v1087_v30 = vld [vmem:[#allocation2 + $0x38] sm:$0xff]   ;;  %v36_v34 = vld [vmem:[%s1291_s0] sm:$0xff]  ;;  %v45_v35 = vpack.c.bf16 %v37_v32, %v37_v32 }
  0x1e   :  { %939 = vmatpush3.bf16.msra.mxu0 %v1067_v10  ;;  %v1084_v27 = vld [vmem:[#allocation2 + $0xb0] sm:$0xff]   ;;  %v1088_v31 = vld [vmem:[#allocation2 + $0xb8] sm:$0xff]   ;;  %v44_v37 = vpack.c.bf16 %v36_v34, %v36_v34  ;;  %v1089_v40 = vld [vmem:[#allocation2 + $0x140] sm:$0xff]  }
  0x1f   :  { %961 = vmatpush3.bf16.msra.mxu1 %v1068_v11  ;;  %940 = vmatprep.subr.bf16.mxu0 %v1069_v12  ;;  %v39_v33 = vld [vmem:[%s1291_s0 + $0x18] sm:$0xff]  ;;  %v38_v38 = vld [vmem:[%s1291_s0 + $0x10] sm:$0xff]  ;;  %v1090_v41 = vld [vmem:[#allocation2 + $0x1c0] sm:$0xff]  }
  0x20   :  { %962 = vmatprep.subr.bf16.mxu1 %v1070_v13  ;;  %v47_v36 = vpack.c.bf16 %v39_v33, %v39_v33  ;;  %v46_v39 = vpack.c.bf16 %v38_v38, %v38_v38  ;;  %603 = vmatprep.mubr.bf16.mxu0 %v45_v35  ;;  %v1091_v42 = vld [vmem:[#allocation2 + $0x100] sm:$0xff]   ;;  %v1093_v44 = vld [vmem:[#allocation2 + $0x148] sm:$0xff]   ;;  %v1097_v48 = vld [vmem:[#allocation2 + $0x150] sm:$0xff]  }
  0x21   :  { %v1092_v43 = vld [vmem:[#allocation2 + $0x180] sm:$0xff]   ;;  %v1094_v45 = vld [vmem:[#allocation2 + $0x1c8] sm:$0xff]   ;;  %v1098_v49 = vld [vmem:[#allocation2 + $0x1d0] sm:$0xff]  }
  0x22   :  { %941 = vmatpush3.bf16.msra.mxu0 %v1071_v14  ;;  %643 = vmatprep.mubr.bf16.mxu1 %v47_v36  ;;  %v1095_v46 = vld [vmem:[#allocation2 + $0x108] sm:$0xff]   ;;  %v1099_v50 = vld [vmem:[#allocation2 + $0x110] sm:$0xff]   ;;  %v1101_v52 = vld [vmem:[#allocation2 + $0x158] sm:$0xff]  }
  0x23   :  { %963 = vmatpush3.bf16.msra.mxu1 %v1072_v15  ;;  %942 = vmatprep.subr.bf16.mxu0 %v1073_v16  ;;  %v1096_v47 = vld [vmem:[#allocation2 + $0x188] sm:$0xff]   ;;  %v1100_v51 = vld [vmem:[#allocation2 + $0x190] sm:$0xff]   ;;  %v1102_v53 = vld [vmem:[#allocation2 + $0x1d8] sm:$0xff]  }
  0x24   :  { %964 = vmatprep.subr.bf16.mxu1 %v1074_v17  ;;  %v1103_v54 = vld [vmem:[#allocation2 + $0x118] sm:$0xff]   ;;  %v1105_v56 = vld [vmem:[#allocation2 + $0x160] sm:$0xff]   ;;  %v1109_v60 = vld [vmem:[#allocation2 + $0x168] sm:$0xff]   ;;  %v1180_v17 = vmov 0.0  }
  0x25   :  { %v1104_v55 = vld [vmem:[#allocation2 + $0x198] sm:$0xff]   ;;  %v1106_v57 = vld [vmem:[#allocation2 + $0x1e0] sm:$0xff]   ;;  %v1110_v61 = vld [vmem:[#allocation2 + $0x1e8] sm:$0xff]  }
  0x26   :  { %943 = vmatpush3.bf16.msra.mxu0 %v1075_v18  ;;  %v1107_v58 = vld [vmem:[#allocation2 + $0x120] sm:$0xff]   ;;  %v1111_v62 = vld [vmem:[#allocation2 + $0x128] sm:$0xff]   ;;  %v1113_v0 = vld [vmem:[#allocation2 + $0x170] sm:$0xff]  }
  0x27   :  { %965 = vmatpush3.bf16.msra.mxu1 %v1076_v19  ;;  %944 = vmatprep.subr.bf16.mxu0 %v1077_v20  ;;  %v1108_v59 = vld [vmem:[#allocation2 + $0x1a0] sm:$0xff]   ;;  %v1112_v63 = vld [vmem:[#allocation2 + $0x1a8] sm:$0xff]   ;;  %v1114_v1 = vld [vmem:[#allocation2 + $0x1f0] sm:$0xff]  }
  0x28   :  { %966 = vmatprep.subr.bf16.mxu1 %v1078_v21  ;;  %v1115_v2 = vld [vmem:[#allocation2 + $0x130] sm:$0xff]   ;;  %v1117_v4 = vld [vmem:[#allocation2 + $0x178] sm:$0xff]   ;;  %v41_v8 = vld [vmem:[%s1291_s0 + $0x28] sm:$0xff] }
  0x29   :  { %v1116_v3 = vld [vmem:[#allocation2 + $0x1b0] sm:$0xff]   ;;  %v1118_v5 = vld [vmem:[#allocation2 + $0x1f8] sm:$0xff]   ;;  %v49_v10 = vpack.c.bf16 %v41_v8, %v41_v8  ;;  %v40_v12 = vld [vmem:[%s1291_s0 + $0x20] sm:$0xff] }
  0x2a   :  { %945 = vmatpush3.bf16.msra.mxu0 %v1079_v22  ;;  %v1119_v6 = vld [vmem:[#allocation2 + $0x138] sm:$0xff]   ;;  %v42_v13 = vld [vmem:[%s1291_s0 + $0x30] sm:$0xff]  ;;  %v48_v14 = vpack.c.bf16 %v40_v12, %v40_v12  ;;  %v1121_v16 = vld [vmem:[%s1294_s3] sm:$0xff]  }
  0x2b   :  { %967 = vmatpush3.bf16.msra.mxu1 %v1080_v23  ;;  %946 = vmatprep.subr.bf16.mxu0 %v1081_v24  ;;  %v1120_v7 = vld [vmem:[#allocation2 + $0x1b8] sm:$0xff]   ;;  %v50_v15 = vpack.c.bf16 %v42_v13, %v42_v13  ;;  %v1122_v18 = vld [vmem:[%s1294_s3 + $0x8] sm:$0xff]   ;;  %v1123_v19 = vld [vmem:[%s1294_s3 + $0x10] sm:$0xff]  }
  0x2c   :  { %968 = vmatprep.subr.bf16.mxu1 %v1082_v25  ;;  %v43_v9 = vld [vmem:[%s1291_s0 + $0x38] sm:$0xff]  ;;  %v1125_v21 = vld [vmem:[%s1294_s3 + $0x20] sm:$0xff]   ;;  %v1126_v22 = vld [vmem:[%s1294_s3 + $0x28] sm:$0xff]  }
  0x2d   :  { %v51_v11 = vpack.c.bf16 %v43_v9, %v43_v9  ;;  %v1124_v20 = vld [vmem:[%s1294_s3 + $0x18] sm:$0xff]   ;;  %v1127_v23 = vld [vmem:[%s1294_s3 + $0x30] sm:$0xff]  }
  0x2e   :  { %947 = vmatpush3.bf16.msra.mxu0 %v1083_v26  ;;  %v1128_v24 = vld [vmem:[%s1294_s3 + $0x38] sm:$0xff]  }
  0x2f   :  { %969 = vmatpush3.bf16.msra.mxu1 %v1084_v27  ;;  %948 = vmatprep.subr.bf16.mxu0 %v1085_v28  ;;  %v860_v27 = vld [vmem:[%s1293_s2] ss:$0 sm:$0xff] }
  0x30   :  { %970 = vmatprep.subr.bf16.mxu1 %v1086_v29 }
  0x32   :  { %949 = vmatpush3.bf16.msra.mxu0 %v1087_v30 }
  0x33   :  { %971 = vmatpush3.bf16.msra.mxu1 %v1088_v31  ;;  %978 = vmatprep.subr.bf16.mxu0 %v1089_v40 }
  0x34   :  { %1000 = vmatprep.subr.bf16.mxu1 %v1090_v41 }
  0x35   :  { %604 = vmatmul.mubr.bf16.vlgmr.msra.gmra.mrb[0].mxu0 %v44_v37 }
  0x36   :  { %644 = vmatmul.mubr.bf16.vlgmr.msra.gmra.mrb[0].mxu1 %v46_v39  ;;  %979 = vmatpush3.bf16.msra.mxu0 %v1091_v42 }
  0x37   :  { %1001 = vmatpush3.bf16.msra.mxu1 %v1092_v43  ;;  %980 = vmatprep.subr.bf16.mxu0 %v1093_v44 }
  0x38   :  { %1002 = vmatprep.subr.bf16.mxu1 %v1094_v45  ;;  %683 = vmatprep.mubr.bf16.mxu0 %v49_v10 }
  0x39   :  { %723 = vmatprep.mubr.bf16.mxu1 %v51_v11 }
  0x3a   :  { %981 = vmatpush3.bf16.msra.mxu0 %v1095_v46 }
  0x3b   :  { %1003 = vmatpush3.bf16.msra.mxu1 %v1096_v47  ;;  %982 = vmatprep.subr.bf16.mxu0 %v1097_v48 }
  0x3c   :  { %1004 = vmatprep.subr.bf16.mxu1 %v1098_v49 }
  0x3e   :  { %983 = vmatpush3.bf16.msra.mxu0 %v1099_v50 }
  0x3f   :  { %1005 = vmatpush3.bf16.msra.mxu1 %v1100_v51  ;;  %984 = vmatprep.subr.bf16.mxu0 %v1101_v52  ;;  %v925_v52 = vld [vmem:[%s1295_s4] ss:$0 sm:$0xff] }
  0x40   :  { %1006 = vmatprep.subr.bf16.mxu1 %v1102_v53 }
  0x42   :  { %985 = vmatpush3.bf16.msra.mxu0 %v1103_v54 }
  0x43   :  { %1007 = vmatpush3.bf16.msra.mxu1 %v1104_v55  ;;  %986 = vmatprep.subr.bf16.mxu0 %v1105_v56 }
  0x44   :  { %1008 = vmatprep.subr.bf16.mxu1 %v1106_v57 }
  0x46   :  { %987 = vmatpush3.bf16.msra.mxu0 %v1107_v58 }
  0x47   :  { %1009 = vmatpush3.bf16.msra.mxu1 %v1108_v59  ;;  %988 = vmatprep.subr.bf16.mxu0 %v1109_v60 }
  0x48   :  { %1010 = vmatprep.subr.bf16.mxu1 %v1110_v61 }
  0x4a   :  { %989 = vmatpush3.bf16.msra.mxu0 %v1111_v62 }
  0x4b   :  { %1011 = vmatpush3.bf16.msra.mxu1 %v1112_v63  ;;  %990 = vmatprep.subr.bf16.mxu0 %v1113_v0 }
  0x4c   :  { %1012 = vmatprep.subr.bf16.mxu1 %v1114_v1 }
  0x4e   :  { %991 = vmatpush3.bf16.msra.mxu0 %v1115_v2 }
  0x4f   :  { %1013 = vmatpush3.bf16.msra.mxu1 %v1116_v3  ;;  %992 = vmatprep.subr.bf16.mxu0 %v1117_v4 }
  0x50   :  { %1014 = vmatprep.subr.bf16.mxu1 %v1118_v5 }
  0x52   :  { %993 = vmatpush3.bf16.msra.mxu0 %v1119_v6 }
  0x53   :  { %1015 = vmatpush3.bf16.msra.mxu1 %v1120_v7  ;;  %1031 = vmatprep.subr.bf16.mxu0 %v1180_v17 }
  0x55   :  { %684 = vmatmul.mubr.bf16.vlgmr.msra.gmra.mrb[4].mxu0 %v48_v14 }
  0x56   :  { %724 = vmatmul.mubr.bf16.vlgmr.msra.gmra.mrb[4].mxu1 %v50_v15  ;;  %1032 = vmatpush3.bf16.msra.mxu0 %v1121_v16 }
  0x57   :  { %1033 = vmatprep.subr.bf16.mxu0 %v1180_v17  ;;  %1047 = vmatprep.mubr.msk.bf16.mxu0 %vm1181_vm0, %v1180_v17 }
  0x5a   :  { %1034 = vmatpush3.bf16.msra.mxu0 %v1122_v18 }
  0x5b   :  { %1035 = vmatprep.subr.bf16.mxu0 %v1180_v17 }
  0x5e   :  { %1036 = vmatpush3.bf16.msra.mxu0 %v1123_v19 }
  0x5f   :  { %1037 = vmatprep.subr.bf16.mxu0 %v1180_v17 }
  0x62   :  { %1038 = vmatpush3.bf16.msra.mxu0 %v1124_v20 }
  0x63   :  { %1039 = vmatprep.subr.bf16.mxu0 %v1180_v17 }
  0x66   :  { %1040 = vmatpush3.bf16.msra.mxu0 %v1125_v21 }
  0x67   :  { %1041 = vmatprep.subr.bf16.mxu0 %v1180_v17 }
  0x6a   :  { %1042 = vmatpush3.bf16.msra.mxu0 %v1126_v22 }
  0x6b   :  { %1043 = vmatprep.subr.bf16.mxu0 %v1180_v17 }
  0x6e   :  { %1044 = vmatpush3.bf16.msra.mxu0 %v1127_v23 }
  0x6f   :  { %1045 = vmatprep.subr.bf16.mxu0 %v1180_v17 }
  0x72   :  { %1046 = vmatpush3.bf16.msra.mxu0 %v1128_v24 }
 0x108   :  { %v950_v25 = vpop.f32.mrb[0].mxu0 }
 0x109   :  { %v972_v26 = vpop.f32.mrb[0].mxu1  ;;  %v951_v28 = vpop.f32.mrb[1].mxu0 }
 0x10a   :  { %v973_v29 = vpop.f32.mrb[1].mxu1  ;;  %v952_v30 = vadd.f32 %v951_v28, %v950_v25  ;;  %v953_v32 = vpop.f32.mrb[2].mxu0 }
 0x10b   :  { %v974_v31 = vadd.f32 %v973_v29, %v972_v26  ;;  %v975_v33 = vpop.f32.mrb[2].mxu1  ;;  %v954_v34 = vpop.f32.mrb[3].mxu0 }
 0x10c   :  { %v976_v35 = vpop.f32.mrb[3].mxu1  ;;  %v606_v36 = vadd.f32 %v952_v30, %v860_v27 }
 0x10e   :  { %v646_v37 = vadd.f32 %v974_v31, %v606_v36 }
 0x128   :  { %v994_v38 = vpop.f32.mrb[4].mxu0 }
 0x129   :  { %v1016_v39 = vpop.f32.mrb[4].mxu1  ;;  %v995_v40 = vpop.f32.mrb[5].mxu0 }
 0x12a   :  { %v996_v41 = vadd.f32 %v995_v40, %v994_v38  ;;  %v1017_v42 = vpop.f32.mrb[5].mxu1  ;;  %v997_v43 = vpop.f32.mrb[6].mxu0 }
 0x12b   :  { %v1018_v44 = vadd.f32 %v1017_v42, %v1016_v39  ;;  %v1019_v45 = vpop.f32.mrb[6].mxu1  ;;  %v998_v46 = vpop.f32.mrb[7].mxu0 }
 0x12c   :  { %v686_v47 = vadd.f32 %v996_v41, %v646_v37  ;;  %v1020_v48 = vpop.f32.mrb[7].mxu1 }
 0x12e   :  { %v726_v49 = vadd.f32 %v1018_v44, %v686_v47 }
 0x130   :  { %v731_v50 = vmax.f32 %v726_v49, 0.0 }
 0x132   :  { %v732_v51 = vpack.c.bf16 %v731_v50, %v731_v50 }
 0x134   :  { %1048 = vmatmul.mubr.bf16.vlgmr.msra.gmra.mrb[8].mxu0 %v732_v51 }
 0x207   :  { %v838_v53 = vpop.f32.mrb[8].mxu0 }
 0x208   :  { %v839_v54 = vadd.f32 %v925_v52, %v838_v53  ;;  %v1049_v55 = vpop.f32.mrb[9].mxu0 }
 0x209   :  { %v841_v56 = vpop.f32.mrb[10].mxu0 }
 0x20a   :  { %844 = vst [vmem:[#allocation5] sm:$0xff] %v839_v54  ;;  %v1050_v57 = vpop.f32.mrb[11].mxu0 }
 0x20b   :  { %1162 = shalt.err (!%p1159_p12)
}
 0x20c   :  { %s1163_s4 = scalar_lea.hbm %s1296_s5, 128 }
 0x20d   :  { %p1164_p13 = scmp.ne.s32.totalorder %s1296_s5, %s1163_s4  ;;  %p1167_p0 = scmp.lt.u32.totalorder %s1163_s4, %s1296_s5 }
 0x20f   :  { %p1169_p1 = pnand %p1167_p0, %p1164_p13 }
 0x211   :  { %1172 = shalt.err (!%p1169_p1)
}
 0x212   :  { %854 = dma.vmem_to_hbm [thread:$0]  %s852_s14, 128, %s1296_s5, [#allocation4]  }
 0x213   :  { %1175 = dma.done.wait [#allocation4], 128  }
 0x214   :  { %1176 = vsyncadd [#allocation4], 4294967168 }
 0x215   :  { %858 = vsyncpa [#allocation3], 1 }
 0x216   :  { %859 = vsyncpa [#allocation4], 1 }

</bundles_post_ra>
